<compile_context>
chip_gen: v6e
topology: v6e:2x2x1
jax: 0.10.0
libtpu: 0.0.40
codegen_flags: <defaults>
</compile_context>

<pallas_src>
import jax
import jax.numpy as jnp
import numpy as np
from jax.experimental import pallas as pl
from jax.experimental.pallas import tpu as pltpu

D_MODEL = 6
NHEAD = 2
D_HEAD = D_MODEL // NHEAD
FF_DIM = 2 * D_MODEL
EPS = 1e-5
SEG = 8  # lane stride of each per-head Q/K/V segment in the packed QKV slab


def _layer_norm(x, gamma, beta):
    # ManualLayerNorm: std with unbiased=False, (x - mean) / (std + eps), exact divide.
    mean = jnp.mean(x, axis=-1, keepdims=True)
    var = jnp.mean((x - mean) ** 2, axis=-1, keepdims=True)
    return gamma * ((x - mean) / (jnp.sqrt(var) + EPS)) + beta


def encoder_kernel(x_ref, w_ref, vec_ref, o_ref):
    D, Dh, H = D_MODEL, D_HEAD, NHEAD

    x = x_ref[...].astype(jnp.float32)          # (B, S, D)
    w = w_ref[...]                              # (48, 48) packed weights
    vec = vec_ref[...]                          # (8, 48) packed vectors

    # --- unpack: all slices are sublane-8-aligned and start at lane 0 ---
    wqkv = w[0:D, :]                            # (D, 48), Q columns pre-scaled
    wo_h = (w[8:8 + Dh, 0:D], w[16:16 + Dh, 0:D])   # per-head wo rows, each (Dh, D)
    wf1 = w[24:24 + D, 0:FF_DIM]                # (D, 2D)
    wf2 = w[32:32 + FF_DIM, 0:D]                # (2D, D)

    bqkv = vec[0:1, :]                          # (1, 48), Q segments pre-scaled
    bo = vec[1:2, 0:D]
    g1 = vec[2:3, 0:D]
    be1 = vec[3:4, 0:D]
    bf1 = vec[4:5, 0:FF_DIM]
    bf2 = vec[5:6, 0:D]
    g2 = vec[6:7, 0:D]
    be2 = vec[7:8, 0:D]

    # --- fused Q/K/V projection (one MXU push; per-head segments lane-padded) ---
    qkv = jnp.einsum("bsd,de->bse", x, wqkv,
                     preferred_element_type=jnp.float32) + bqkv   # (B, S, 48)

    contribs = []
    for h in range(H):                          # static python loop, NHEAD == 2
        q = qkv[:, :, h * SEG:h * SEG + Dh]                         # pre-scaled
        k = qkv[:, :, (H + h) * SEG:(H + h) * SEG + Dh]
        v = qkv[:, :, (2 * H + h) * SEG:(2 * H + h) * SEG + Dh]

        # contract last axes directly -> no explicit k.T (no XLU transpose)
        scores = jnp.einsum("bqd,bkd->bqk", q, k,
                            preferred_element_type=jnp.float32)
        m = jnp.max(scores, axis=-1, keepdims=True)
        e = jnp.exp(scores - m)
        wgt = e / jnp.sum(e, axis=-1, keepdims=True)                 # exact softmax
        attn = jnp.einsum("bqk,bkd->bqd", wgt, v,
                          preferred_element_type=jnp.float32)        # (B, S, Dh)

        # fold the head-concat into Wo: attn_h @ wo[h*Dh:(h+1)*Dh, :]
        contribs.append(jnp.einsum("bsh,hd->bsd", attn, wo_h[h],
                                   preferred_element_type=jnp.float32))

    proj = contribs[0]
    for c in contribs[1:]:
        proj = proj + c
    proj = proj + bo

    h1 = _layer_norm(x + proj, g1, be1)                              # (B, S, D)

    ff = jnp.einsum("bsd,df->bsf", h1, wf1,
                    preferred_element_type=jnp.float32) + bf1
    ff = jnp.maximum(ff, 0.0)                                        # ReLU
    ff = jnp.einsum("bsf,fd->bsd", ff, wf2,
                    preferred_element_type=jnp.float32) + bf2

    out = _layer_norm(h1 + ff, g2, be2)
    # TODO(synk): if B*S grows into the thousands, switch to a token-on-lanes
    # layout (last dim >= 128) for unmasked vst stores and add a "parallel"
    # batch grid axis for v7x's two TensorCores; pointless at B*S = 16.
    o_ref[...] = out.astype(o_ref.dtype)


def pack_params(p):
    """One-time (init-time) packing of all parameters into two aligned slabs."""
    D, Dh, H = D_MODEL, D_HEAD, NHEAD
    scale = 1.0 / (Dh ** 0.5)

    big_w = np.zeros((48, 48), np.float32)
    big_vec = np.zeros((8, 48), np.float32)

    # fused QKV weight/bias, per-head segments padded to SEG lanes; Q pre-scaled
    for h in range(H):
        big_w[0:D, h * SEG:h * SEG + Dh] = np.asarray(p["wq"][h]) * scale
        big_w[0:D, (H + h) * SEG:(H + h) * SEG + Dh] = np.asarray(p["wk"][h])
        big_w[0:D, (2 * H + h) * SEG:(2 * H + h) * SEG + Dh] = np.asarray(p["wv"][h])
        big_vec[0, h * SEG:h * SEG + Dh] = np.asarray(p["bq"][h]).reshape(-1) * scale
        big_vec[0, (H + h) * SEG:(H + h) * SEG + Dh] = np.asarray(p["bk"][h]).reshape(-1)
        big_vec[0, (2 * H + h) * SEG:(2 * H + h) * SEG + Dh] = np.asarray(p["bv"][h]).reshape(-1)

    # wo split per head at 8-aligned sublane offsets (concat folded into Wo)
    wo = np.asarray(p["wo"])
    big_w[8:8 + Dh, 0:D] = wo[0:Dh, :]
    big_w[16:16 + Dh, 0:D] = wo[Dh:2 * Dh, :]

    big_w[24:24 + D, 0:FF_DIM] = np.asarray(p["wf1"])
    big_w[32:32 + FF_DIM, 0:D] = np.asarray(p["wf2"])

    big_vec[1, 0:D] = np.asarray(p["bo"]).reshape(-1)
    big_vec[2, 0:D] = np.asarray(p["g1"]).reshape(-1)
    big_vec[3, 0:D] = np.asarray(p["be1"]).reshape(-1)
    big_vec[4, 0:FF_DIM] = np.asarray(p["bf1"]).reshape(-1)
    big_vec[5, 0:D] = np.asarray(p["bf2"]).reshape(-1)
    big_vec[6, 0:D] = np.asarray(p["g2"]).reshape(-1)
    big_vec[7, 0:D] = np.asarray(p["be2"]).reshape(-1)
    return jnp.asarray(big_w), jnp.asarray(big_vec)


def _encoder_pallas(x, big_w, big_vec):
    B, S, D = x.shape
    return pl.pallas_call(
        encoder_kernel,
        out_shape=jax.ShapeDtypeStruct((B, S, D), x.dtype),
        grid_spec=pltpu.PrefetchScalarGridSpec(
            num_scalar_prefetch=0,
            grid=(1,),                             # whole batch in one step
            in_specs=[
                pl.BlockSpec((B, S, D), lambda i: (0, 0, 0)),
                pl.BlockSpec((48, 48), lambda i: (0, 0)),
                pl.BlockSpec((8, 48), lambda i: (0, 0)),
            ],
            out_specs=pl.BlockSpec((B, S, D), lambda i: (0, 0, 0)),
        ),
        compiler_params=pltpu.CompilerParams(
            dimension_semantics=("arbitrary",),
        ),
    )(x, big_w, big_vec)


# jitted call path: a single dispatch per call (packing is done once at init).
simple_encoder = jax.jit(_encoder_pallas)


def init_params(key):
    """Deterministic synthetic parameters, shapes as in SimpleEncoder.__init__."""
    ks = jax.random.split(key, 9)
    scale = 0.1
    p = {
        # per-head projections, stacked over heads: (H, D, Dh) with (in, out) layout
        "wq": scale * jax.random.normal(ks[0], (NHEAD, D_MODEL, D_HEAD), jnp.float32),
        "bq": scale * jax.random.normal(ks[1], (NHEAD, 1, D_HEAD), jnp.float32),
        "wk": scale * jax.random.normal(ks[2], (NHEAD, D_MODEL, D_HEAD), jnp.float32),
        "bk": scale * jax.random.normal(ks[3], (NHEAD, 1, D_HEAD), jnp.float32),
        "wv": scale * jax.random.normal(ks[4], (NHEAD, D_MODEL, D_HEAD), jnp.float32),
        "bv": scale * jax.random.normal(ks[5], (NHEAD, 1, D_HEAD), jnp.float32),
        # output projection
        "wo": scale * jax.random.normal(ks[6], (D_MODEL, D_MODEL), jnp.float32),
        "bo": jnp.zeros((1, D_MODEL), jnp.float32),
        # norm1
        "g1": jnp.ones((1, D_MODEL), jnp.float32),
        "be1": jnp.zeros((1, D_MODEL), jnp.float32),
        # feed-forward
        "wf1": scale * jax.random.normal(ks[7], (D_MODEL, FF_DIM), jnp.float32),
        "bf1": jnp.zeros((1, FF_DIM), jnp.float32),
        "wf2": scale * jax.random.normal(ks[8], (FF_DIM, D_MODEL), jnp.float32),
        "bf2": jnp.zeros((1, D_MODEL), jnp.float32),
        # norm2
        "g2": jnp.ones((1, D_MODEL), jnp.float32),
        "be2": jnp.zeros((1, D_MODEL), jnp.float32),
    }
    return p


def _ref_layer_norm(x, gamma, beta):
    mean = jnp.mean(x, axis=-1, keepdims=True)
    var = jnp.mean((x - mean) ** 2, axis=-1, keepdims=True)
    std = jnp.sqrt(var)
    return gamma * ((x - mean) / (std + EPS)) + beta


def reference_forward(x, p):
    """Pure-JAX reference mirroring the PyTorch forward (for correctness check)."""
    attn_outputs = []
    for h in range(NHEAD):
        q = x @ p["wq"][h] + p["bq"][h]
        k = x @ p["wk"][h] + p["bk"][h]
        v = x @ p["wv"][h] + p["bv"][h]
        scores = (q @ jnp.swapaxes(k, -2, -1)) / (D_HEAD ** 0.5)
        w = jax.nn.softmax(scores, axis=-1)
        attn_outputs.append(w @ v)
    concat = jnp.concatenate(attn_outputs, axis=-1)
    proj = concat @ p["wo"] + p["bo"]
    h1 = _ref_layer_norm(x + proj, p["g1"], p["be1"])
    ff = jnp.maximum(h1 @ p["wf1"] + p["bf1"], 0.0) @ p["wf2"] + p["bf2"]
    return _ref_layer_norm(h1 + ff, p["g2"], p["be2"])


if __name__ == "__main__":
    B, S = 2, 8
    key = jax.random.PRNGKey(0)
    x = jax.random.normal(key, (B, S, D_MODEL), jnp.float32)

    params = init_params(jax.random.PRNGKey(42))
    big_w, big_vec = pack_params(params)        # init-time packing, not per-call

    out = simple_encoder(x, big_w, big_vec)
    out = jax.block_until_ready(out)

    ref = reference_forward(x, params)
    np.testing.assert_allclose(np.asarray(out), np.asarray(ref), rtol=1e-4, atol=1e-5)

    print("KERNEL_OK")
</pallas_src>

<mosaic_0001>
module attributes {stable_mosaic.version = 11 : i64} {
  func.func @encoder_kernel(%arg0: i32, %arg1: memref<2x8x6xf32, #tpu.memory_space<vmem>>, %arg2: memref<48x48xf32, #tpu.memory_space<vmem>>, %arg3: memref<8x48xf32, #tpu.memory_space<vmem>>, %arg4: memref<2x8x6xf32, #tpu.memory_space<vmem>>) attributes {dimension_semantics = [#tpu.dimension_semantics<arbitrary>], iteration_bounds = array<i64: 1>, scalar_prefetch = 0 : i64, scratch_operands = 0 : i64, tpu.core_type = #tpu.core_type<tc>, window_params = [{pipeline_mode = #tpu.pipeline_mode<synchronous>, transform_indices = @transform_0, window_bounds = array<i64: 2, 8, 6>}, {pipeline_mode = #tpu.pipeline_mode<synchronous>, transform_indices = @transform_1, window_bounds = array<i64: 48, 48>}, {pipeline_mode = #tpu.pipeline_mode<synchronous>, transform_indices = @transform_2, window_bounds = array<i64: 8, 48>}, {pipeline_mode = #tpu.pipeline_mode<synchronous>, transform_indices = @transform_3, window_bounds = array<i64: 2, 8, 6>}]} {
    %c0 = arith.constant 0 : index
    %c0_0 = arith.constant 0 : index
    %c0_1 = arith.constant 0 : index
    %0 = vector.load %arg1[%c0, %c0_0, %c0_1] : memref<2x8x6xf32, #tpu.memory_space<vmem>>, vector<2x8x6xf32>
    %c0_2 = arith.constant 0 : index
    %c0_3 = arith.constant 0 : index
    %1 = vector.load %arg2[%c0_2, %c0_3] : memref<48x48xf32, #tpu.memory_space<vmem>>, vector<48x48xf32>
    %c0_4 = arith.constant 0 : index
    %c0_5 = arith.constant 0 : index
    %2 = vector.load %arg3[%c0_4, %c0_5] : memref<8x48xf32, #tpu.memory_space<vmem>>, vector<8x48xf32>
    %3 = vector.extract_strided_slice %1 {offsets = [0, 0], sizes = [6, 48], strides = [1, 1]} : vector<48x48xf32> to vector<6x48xf32>
    %4 = vector.extract_strided_slice %1 {offsets = [8, 0], sizes = [3, 6], strides = [1, 1]} : vector<48x48xf32> to vector<3x6xf32>
    %5 = vector.extract_strided_slice %1 {offsets = [16, 0], sizes = [3, 6], strides = [1, 1]} : vector<48x48xf32> to vector<3x6xf32>
    %6 = vector.extract_strided_slice %1 {offsets = [24, 0], sizes = [6, 12], strides = [1, 1]} : vector<48x48xf32> to vector<6x12xf32>
    %7 = vector.extract_strided_slice %1 {offsets = [32, 0], sizes = [12, 6], strides = [1, 1]} : vector<48x48xf32> to vector<12x6xf32>
    %8 = vector.extract_strided_slice %2 {offsets = [0, 0], sizes = [1, 48], strides = [1, 1]} : vector<8x48xf32> to vector<1x48xf32>
    %9 = vector.extract_strided_slice %2 {offsets = [1, 0], sizes = [1, 6], strides = [1, 1]} : vector<8x48xf32> to vector<1x6xf32>
    %10 = vector.extract_strided_slice %2 {offsets = [2, 0], sizes = [1, 6], strides = [1, 1]} : vector<8x48xf32> to vector<1x6xf32>
    %11 = vector.extract_strided_slice %2 {offsets = [3, 0], sizes = [1, 6], strides = [1, 1]} : vector<8x48xf32> to vector<1x6xf32>
    %12 = vector.extract_strided_slice %2 {offsets = [4, 0], sizes = [1, 12], strides = [1, 1]} : vector<8x48xf32> to vector<1x12xf32>
    %13 = vector.extract_strided_slice %2 {offsets = [5, 0], sizes = [1, 6], strides = [1, 1]} : vector<8x48xf32> to vector<1x6xf32>
    %14 = vector.extract_strided_slice %2 {offsets = [6, 0], sizes = [1, 6], strides = [1, 1]} : vector<8x48xf32> to vector<1x6xf32>
    %15 = vector.extract_strided_slice %2 {offsets = [7, 0], sizes = [1, 6], strides = [1, 1]} : vector<8x48xf32> to vector<1x6xf32>
    "tpu.trace_start"() <{level = 10 : i32, message = "bsd,de->bse"}> : () -> ()
    %cst = arith.constant dense<0.000000e+00> : vector<2x8x48xf32>
    %16 = tpu.matmul %0, %3, %cst {dimension_numbers = #tpu.dot_dimension_numbers<[2], [0], [0, 1], [1], [0, 0, 0, 1, 1, 1], [], []>} : vector<2x8x6xf32>, vector<6x48xf32>, vector<2x8x48xf32> -> vector<2x8x48xf32>
    "tpu.trace_stop"() : () -> ()
    %17 = vector.shape_cast %8 : vector<1x48xf32> to vector<1x1x48xf32>
    %18 = vector.broadcast %17 : vector<1x1x48xf32> to vector<2x8x48xf32>
    %19 = arith.addf %16, %18 : vector<2x8x48xf32>
    %20 = vector.extract_strided_slice %19 {offsets = [0, 0, 0], sizes = [2, 8, 3], strides = [1, 1, 1]} : vector<2x8x48xf32> to vector<2x8x3xf32>
    %21 = vector.extract_strided_slice %19 {offsets = [0, 0, 16], sizes = [2, 8, 3], strides = [1, 1, 1]} : vector<2x8x48xf32> to vector<2x8x3xf32>
    %22 = vector.extract_strided_slice %19 {offsets = [0, 0, 32], sizes = [2, 8, 3], strides = [1, 1, 1]} : vector<2x8x48xf32> to vector<2x8x3xf32>
    "tpu.trace_start"() <{level = 10 : i32, message = "bqd,bkd->bqk"}> : () -> ()
    %cst_6 = arith.constant dense<0.000000e+00> : vector<2x8x8xf32>
    %23 = tpu.matmul %20, %21, %cst_6 {dimension_numbers = #tpu.dot_dimension_numbers<[2], [2], [1], [1], [0, 0, 0, 1, 1, 1], [0], [0]>} : vector<2x8x3xf32>, vector<2x8x3xf32>, vector<2x8x8xf32> -> vector<2x8x8xf32>
    "tpu.trace_stop"() : () -> ()
    %cst_7 = arith.constant dense<0xFF800000> : vector<2x8xf32>
    %24 = vector.multi_reduction <maximumf>, %23, %cst_7 [2] : vector<2x8x8xf32> to vector<2x8xf32>
    %25 = vector.shape_cast %24 : vector<2x8xf32> to vector<2x8x1xf32>
    %26 = vector.broadcast %25 : vector<2x8x1xf32> to vector<2x8x8xf32>
    %27 = arith.subf %23, %26 : vector<2x8x8xf32>
    %28 = math.exp %27 : vector<2x8x8xf32>
    %cst_8 = arith.constant dense<0.000000e+00> : vector<2x8xf32>
    %29 = vector.multi_reduction <add>, %28, %cst_8 [2] : vector<2x8x8xf32> to vector<2x8xf32>
    %30 = vector.shape_cast %29 : vector<2x8xf32> to vector<2x8x1xf32>
    %31 = vector.broadcast %30 : vector<2x8x1xf32> to vector<2x8x8xf32>
    %32 = arith.divf %28, %31 : vector<2x8x8xf32>
    "tpu.trace_start"() <{level = 10 : i32, message = "bqk,bkd->bqd"}> : () -> ()
    %cst_9 = arith.constant dense<0.000000e+00> : vector<2x8x3xf32>
    %33 = tpu.matmul %32, %22, %cst_9 {dimension_numbers = #tpu.dot_dimension_numbers<[2], [1], [1], [2], [0, 0, 0, 1, 1, 2], [0], [0]>} : vector<2x8x8xf32>, vector<2x8x3xf32>, vector<2x8x3xf32> -> vector<2x8x3xf32>
    "tpu.trace_stop"() : () -> ()
    "tpu.trace_start"() <{level = 10 : i32, message = "bsh,hd->bsd"}> : () -> ()
    %cst_10 = arith.constant dense<0.000000e+00> : vector<2x8x6xf32>
    %34 = tpu.matmul %33, %4, %cst_10 {dimension_numbers = #tpu.dot_dimension_numbers<[2], [0], [0, 1], [1], [0, 0, 0, 1, 1, 1], [], []>} : vector<2x8x3xf32>, vector<3x6xf32>, vector<2x8x6xf32> -> vector<2x8x6xf32>
    "tpu.trace_stop"() : () -> ()
    %35 = vector.extract_strided_slice %19 {offsets = [0, 0, 8], sizes = [2, 8, 3], strides = [1, 1, 1]} : vector<2x8x48xf32> to vector<2x8x3xf32>
    %36 = vector.extract_strided_slice %19 {offsets = [0, 0, 24], sizes = [2, 8, 3], strides = [1, 1, 1]} : vector<2x8x48xf32> to vector<2x8x3xf32>
    %37 = vector.extract_strided_slice %19 {offsets = [0, 0, 40], sizes = [2, 8, 3], strides = [1, 1, 1]} : vector<2x8x48xf32> to vector<2x8x3xf32>
    "tpu.trace_start"() <{level = 10 : i32, message = "bqd,bkd->bqk"}> : () -> ()
    %cst_11 = arith.constant dense<0.000000e+00> : vector<2x8x8xf32>
    %38 = tpu.matmul %35, %36, %cst_11 {dimension_numbers = #tpu.dot_dimension_numbers<[2], [2], [1], [1], [0, 0, 0, 1, 1, 1], [0], [0]>} : vector<2x8x3xf32>, vector<2x8x3xf32>, vector<2x8x8xf32> -> vector<2x8x8xf32>
    "tpu.trace_stop"() : () -> ()
    %cst_12 = arith.constant dense<0xFF800000> : vector<2x8xf32>
    %39 = vector.multi_reduction <maximumf>, %38, %cst_12 [2] : vector<2x8x8xf32> to vector<2x8xf32>
    %40 = vector.shape_cast %39 : vector<2x8xf32> to vector<2x8x1xf32>
    %41 = vector.broadcast %40 : vector<2x8x1xf32> to vector<2x8x8xf32>
    %42 = arith.subf %38, %41 : vector<2x8x8xf32>
    %43 = math.exp %42 : vector<2x8x8xf32>
    %cst_13 = arith.constant dense<0.000000e+00> : vector<2x8xf32>
    %44 = vector.multi_reduction <add>, %43, %cst_13 [2] : vector<2x8x8xf32> to vector<2x8xf32>
    %45 = vector.shape_cast %44 : vector<2x8xf32> to vector<2x8x1xf32>
    %46 = vector.broadcast %45 : vector<2x8x1xf32> to vector<2x8x8xf32>
    %47 = arith.divf %43, %46 : vector<2x8x8xf32>
    "tpu.trace_start"() <{level = 10 : i32, message = "bqk,bkd->bqd"}> : () -> ()
    %cst_14 = arith.constant dense<0.000000e+00> : vector<2x8x3xf32>
    %48 = tpu.matmul %47, %37, %cst_14 {dimension_numbers = #tpu.dot_dimension_numbers<[2], [1], [1], [2], [0, 0, 0, 1, 1, 2], [0], [0]>} : vector<2x8x8xf32>, vector<2x8x3xf32>, vector<2x8x3xf32> -> vector<2x8x3xf32>
    "tpu.trace_stop"() : () -> ()
    "tpu.trace_start"() <{level = 10 : i32, message = "bsh,hd->bsd"}> : () -> ()
    %cst_15 = arith.constant dense<0.000000e+00> : vector<2x8x6xf32>
    %49 = tpu.matmul %48, %5, %cst_15 {dimension_numbers = #tpu.dot_dimension_numbers<[2], [0], [0, 1], [1], [0, 0, 0, 1, 1, 1], [], []>} : vector<2x8x3xf32>, vector<3x6xf32>, vector<2x8x6xf32> -> vector<2x8x6xf32>
    "tpu.trace_stop"() : () -> ()
    %50 = arith.addf %34, %49 : vector<2x8x6xf32>
    %51 = vector.shape_cast %9 : vector<1x6xf32> to vector<1x1x6xf32>
    %52 = vector.broadcast %51 : vector<1x1x6xf32> to vector<2x8x6xf32>
    %53 = arith.addf %50, %52 : vector<2x8x6xf32>
    %54 = arith.addf %0, %53 : vector<2x8x6xf32>
    %cst_16 = arith.constant dense<0.000000e+00> : vector<2x8xf32>
    %55 = vector.multi_reduction <add>, %54, %cst_16 [2] : vector<2x8x6xf32> to vector<2x8xf32>
    %56 = vector.shape_cast %55 : vector<2x8xf32> to vector<2x8x1xf32>
    %cst_17 = arith.constant 6.000000e+00 : f32
    %57 = vector.broadcast %cst_17 : f32 to vector<2x8x1xf32>
    %58 = arith.divf %56, %57 : vector<2x8x1xf32>
    %59 = vector.broadcast %58 : vector<2x8x1xf32> to vector<2x8x6xf32>
    %60 = arith.subf %54, %59 : vector<2x8x6xf32>
    %61 = arith.mulf %60, %60 : vector<2x8x6xf32>
    %cst_18 = arith.constant dense<0.000000e+00> : vector<2x8xf32>
    %62 = vector.multi_reduction <add>, %61, %cst_18 [2] : vector<2x8x6xf32> to vector<2x8xf32>
    %63 = vector.shape_cast %62 : vector<2x8xf32> to vector<2x8x1xf32>
    %cst_19 = arith.constant 6.000000e+00 : f32
    %64 = vector.broadcast %cst_19 : f32 to vector<2x8x1xf32>
    %65 = arith.divf %63, %64 : vector<2x8x1xf32>
    %66 = vector.broadcast %58 : vector<2x8x1xf32> to vector<2x8x6xf32>
    %67 = arith.subf %54, %66 : vector<2x8x6xf32>
    %68 = math.sqrt %65 : vector<2x8x1xf32>
    %cst_20 = arith.constant 9.99999974E-6 : f32
    %69 = vector.broadcast %cst_20 : f32 to vector<2x8x1xf32>
    %70 = arith.addf %68, %69 : vector<2x8x1xf32>
    %71 = vector.broadcast %70 : vector<2x8x1xf32> to vector<2x8x6xf32>
    %72 = arith.divf %67, %71 : vector<2x8x6xf32>
    %73 = vector.shape_cast %10 : vector<1x6xf32> to vector<1x1x6xf32>
    %74 = vector.broadcast %73 : vector<1x1x6xf32> to vector<2x8x6xf32>
    %75 = arith.mulf %74, %72 : vector<2x8x6xf32>
    %76 = vector.shape_cast %11 : vector<1x6xf32> to vector<1x1x6xf32>
    %77 = vector.broadcast %76 : vector<1x1x6xf32> to vector<2x8x6xf32>
    %78 = arith.addf %75, %77 : vector<2x8x6xf32>
    "tpu.trace_start"() <{level = 10 : i32, message = "bsd,df->bsf"}> : () -> ()
    %cst_21 = arith.constant dense<0.000000e+00> : vector<2x8x12xf32>
    %79 = tpu.matmul %78, %6, %cst_21 {dimension_numbers = #tpu.dot_dimension_numbers<[2], [0], [0, 1], [1], [0, 0, 0, 1, 1, 1], [], []>} : vector<2x8x6xf32>, vector<6x12xf32>, vector<2x8x12xf32> -> vector<2x8x12xf32>
    "tpu.trace_stop"() : () -> ()
    %80 = vector.shape_cast %12 : vector<1x12xf32> to vector<1x1x12xf32>
    %81 = vector.broadcast %80 : vector<1x1x12xf32> to vector<2x8x12xf32>
    %82 = arith.addf %79, %81 : vector<2x8x12xf32>
    %cst_22 = arith.constant 0.000000e+00 : f32
    %83 = vector.broadcast %cst_22 : f32 to vector<2x8x12xf32>
    %84 = arith.maximumf %82, %83 : vector<2x8x12xf32>
    "tpu.trace_start"() <{level = 10 : i32, message = "bsf,fd->bsd"}> : () -> ()
    %cst_23 = arith.constant dense<0.000000e+00> : vector<2x8x6xf32>
    %85 = tpu.matmul %84, %7, %cst_23 {dimension_numbers = #tpu.dot_dimension_numbers<[2], [0], [0, 1], [1], [0, 0, 0, 1, 1, 1], [], []>} : vector<2x8x12xf32>, vector<12x6xf32>, vector<2x8x6xf32> -> vector<2x8x6xf32>
    "tpu.trace_stop"() : () -> ()
    %86 = vector.shape_cast %13 : vector<1x6xf32> to vector<1x1x6xf32>
    %87 = vector.broadcast %86 : vector<1x1x6xf32> to vector<2x8x6xf32>
    %88 = arith.addf %85, %87 : vector<2x8x6xf32>
    %89 = arith.addf %78, %88 : vector<2x8x6xf32>
    %cst_24 = arith.constant dense<0.000000e+00> : vector<2x8xf32>
    %90 = vector.multi_reduction <add>, %89, %cst_24 [2] : vector<2x8x6xf32> to vector<2x8xf32>
    %91 = vector.shape_cast %90 : vector<2x8xf32> to vector<2x8x1xf32>
    %cst_25 = arith.constant 6.000000e+00 : f32
    %92 = vector.broadcast %cst_25 : f32 to vector<2x8x1xf32>
    %93 = arith.divf %91, %92 : vector<2x8x1xf32>
    %94 = vector.broadcast %93 : vector<2x8x1xf32> to vector<2x8x6xf32>
    %95 = arith.subf %89, %94 : vector<2x8x6xf32>
    %96 = arith.mulf %95, %95 : vector<2x8x6xf32>
    %cst_26 = arith.constant dense<0.000000e+00> : vector<2x8xf32>
    %97 = vector.multi_reduction <add>, %96, %cst_26 [2] : vector<2x8x6xf32> to vector<2x8xf32>
    %98 = vector.shape_cast %97 : vector<2x8xf32> to vector<2x8x1xf32>
    %cst_27 = arith.constant 6.000000e+00 : f32
    %99 = vector.broadcast %cst_27 : f32 to vector<2x8x1xf32>
    %100 = arith.divf %98, %99 : vector<2x8x1xf32>
    %101 = vector.broadcast %93 : vector<2x8x1xf32> to vector<2x8x6xf32>
    %102 = arith.subf %89, %101 : vector<2x8x6xf32>
    %103 = math.sqrt %100 : vector<2x8x1xf32>
    %cst_28 = arith.constant 9.99999974E-6 : f32
    %104 = vector.broadcast %cst_28 : f32 to vector<2x8x1xf32>
    %105 = arith.addf %103, %104 : vector<2x8x1xf32>
    %106 = vector.broadcast %105 : vector<2x8x1xf32> to vector<2x8x6xf32>
    %107 = arith.divf %102, %106 : vector<2x8x6xf32>
    %108 = vector.shape_cast %14 : vector<1x6xf32> to vector<1x1x6xf32>
    %109 = vector.broadcast %108 : vector<1x1x6xf32> to vector<2x8x6xf32>
    %110 = arith.mulf %109, %107 : vector<2x8x6xf32>
    %111 = vector.shape_cast %15 : vector<1x6xf32> to vector<1x1x6xf32>
    %112 = vector.broadcast %111 : vector<1x1x6xf32> to vector<2x8x6xf32>
    %113 = arith.addf %110, %112 : vector<2x8x6xf32>
    %c0_29 = arith.constant 0 : index
    %c0_30 = arith.constant 0 : index
    %c0_31 = arith.constant 0 : index
    %114 = vector.load %arg4[%c0_29, %c0_30, %c0_31] : memref<2x8x6xf32, #tpu.memory_space<vmem>>, vector<2x8x6xf32>
    tpu.vector_store %arg4[%c0_29, %c0_30, %c0_31], %113 {strides = array<i32>} : memref<2x8x6xf32, #tpu.memory_space<vmem>>, vector<2x8x6xf32>,
    return
  }
  func.func @transform_0(%arg0: i32) -> (i32, i32, i32) {
    %c0_i32 = arith.constant 0 : i32
    %c0_i32_0 = arith.constant 0 : i32
    %c0_i32_1 = arith.constant 0 : i32
    %c0_i32_2 = arith.constant 0 : i32
    return %c0_i32, %c0_i32_0, %c0_i32_1 : i32, i32, i32
  }
  func.func @transform_1(%arg0: i32) -> (i32, i32) {
    %c0_i32 = arith.constant 0 : i32
    %c0_i32_0 = arith.constant 0 : i32
    %c0_i32_1 = arith.constant 0 : i32
    return %c0_i32, %c0_i32_0 : i32, i32
  }
  func.func @transform_2(%arg0: i32) -> (i32, i32) {
    %c0_i32 = arith.constant 0 : i32
    %c0_i32_0 = arith.constant 0 : i32
    %c0_i32_1 = arith.constant 0 : i32
    return %c0_i32, %c0_i32_0 : i32, i32
  }
  func.func @transform_3(%arg0: i32) -> (i32, i32, i32) {
    %c0_i32 = arith.constant 0 : i32
    %c0_i32_0 = arith.constant 0 : i32
    %c0_i32_1 = arith.constant 0 : i32
    %c0_i32_2 = arith.constant 0 : i32
    return %c0_i32, %c0_i32_0, %c0_i32_1 : i32, i32, i32
  }
}

</mosaic_0001>

<bundles_post_ra>
// kernel: _encoder_pallas.1
= control target key start
LH: loop header
LB: loop body
LE: loop exit
PB: predicated region body
PF: predicated region fallthrough
CT: control target
= control target key end

     0   :  { %8 = vsyncpa [#allocation3], 0  ;;  %s1448_s12 = smov [#allocation2]   ;;  %s1610_s0 = inlined_call_operand.vmem [shape: f32[2,8,6], index: 0, kind: input, shape index: {}]   ;;  %s1611_s1 = inlined_call_operand.hbm [shape: f32[48,48], index: 1, kind: input, shape index: {}]   ;;  %s1612_s2 = inlined_call_operand.vmem [shape: f32[8,48], index: 2, kind: input, shape index: {}]   ;;  %s1613_s3 = inlined_call_operand.vmem [shape: f32[2,8,6], index: 3, kind: output, shape index: {}]  }
   0x1   :  { %s16_s13 = sshll.u32 %s1448_s12, 4  ;;  %s17_s13 = int_to_ptr.vmem [resolvable:$true] %s16_s13 }
   0x2   :  { %s1434_s14 = scalar_lea.vmem %s17_s13, 768  ;;  %p1439_p1 = scmp.lt.s32.totalorder %s17_s13, %s17_s13 }
   0x3   :  { %p1435_p0 = scmp.ne.s32.totalorder %s17_s13, %s1434_s14  ;;  %p1440_p2 = scmp.lt.s32.totalorder %s1434_s14, %s1434_s14 }
   0x5   :  { %p1441_p3 = por %p1440_p2, %p1439_p1 }
   0x7   :  { %p1442_p4 = pnand %p1441_p3, %p1435_p0 }
   0x9   :  { %1445 = shalt.err (!%p1442_p4)
}
   0xa   :  { %s1449_s15 = smov 128   ;;  %s1450_s16 = smov 8  }
   0xb   :  { %22 = dma.hbm_to_vmem [thread:$0]  %s1611_s1, 768, %s17_s13, [#allocation3], %s1449_s15, %s1449_s15, %s1450_s16  }
   0xc   :  { %1446 = dma.done.wait [#allocation3], 768  }
   0xd   :  { %1447 = vsyncadd [#allocation3], 4294966528  ;;  %vm48_vm0 = vcmask 1045504   ;;  %vm41_vm1 = vcmask 48128   ;;  %v30_v0 = vld [vmem:[#allocation2] sm:$0xff]  ;;  %v1489_v2 = vld [vmem:[%s1610_s0 + $0x8] sm:$0xff]  ;;  %v37_v4 = vlaneseq }
   0xe   :  { %v1484_v1 = vld [vmem:[%s1610_s0] sm:$0xff]  ;;  %1317 = vmatprep.subr.msk.mxu0 %vm48_vm0, %v30_v0  ;;  %v1451_v3 = vmov 0.0   ;;  %vm1452_vm2 = vmmov 0   ;;  %s1453_s23 = smov 112   ;;  %vm130_vm3 = vcmask 23552   ;;  %vm282_vm4 = vcmask 64512  }
   0xf   :  { %1319 = vmatprep.mubr.msk.f32.mxu0 %vm41_vm1, %v1484_v1  ;;  %1318 = vmatpush3.msk.msra.mxu0 %vm48_vm0, %v30_v0  ;;  %v1499_v5 = vshrl.u32 %v37_v4, 7  ;;  %v1509_v7 = vld [vmem:[%s1612_s2] sm:$0xff]  ;;  %s1454_s2 = smov 96   ;;  %s1455_s24 = smov 120   ;;  %v31_v0 = vld [vmem:[#allocation2 + $0x8] sm:$0xff]  ;;  %vm793_vm5 = vcmask 1042432  }
  0x10   :  { %1320 = vmatmul.mubr.msk.f32.vlgmr.msra.gmra.mxu0 %vm41_vm1, %v1489_v2  ;;  %1322 = vmatprep.subr.mxu1 %v1451_v3  ;;  %s1456_s25 = smov 104   ;;  %s1457_s26 = smov 88   ;;  %vm1118_vm10 = vcmask 1043456   ;;  %vm1111_vm11 = vcmask 97280  }
  0x11   :  { %1327 = vmatprep.subr.mxu0 %v1451_v3  ;;  %1324 = vmatprep.mubr.msk.f32.mxu1 %vm1452_vm2, %v1451_v3  ;;  %v39_v6 = vsub.s32 0, %v1499_v5 }
  0x12   :  { %1329 = vmatprep.mubr.msk.f32.mxu0 %vm1452_vm2, %v1451_v3 }
  0x13   :  { %v40_v9 = vrot.slane %v1509_v7, %v39_v6 }
  0xd0   :  { %v1321_v8 = vpop.f32.mrf.mxu0 }
  0xd1   :  { %v1515_v12 = vadd.f32 %v1321_v8, %v40_v9 }
  0xd2   :  { %v118_v10 = vpop.f32.mrf.mxu0 }
  0xd3   :  { %v1512_v11 = vadd.f32 %v118_v10, %v40_v9 }
  0xd5   :  { %128 = vrot.lane.b32.xlu0 %v1512_v11, %s1453_s23 }
  0xd9   :  { %206 = vrot.lane.b32.xlu0 %v1515_v12, %s1453_s23 }
 0x147   :  { %v129_v13 = vpop.permute.xlu0 %128 }
 0x148   :  { %1323 = vmatpush3.xpose.msk.msra.mxu1 %vm130_vm3, %v129_v13 }
 0x149   :  { %1332 = vmatprep.subr.mxu1 %v1451_v3 }
 0x14b   :  { %1325 = vmatmul.mubr.msk.f32.vlgmr.msra.gmra.mxu1 %vm130_vm3, %v1512_v11  ;;  %v207_v14 = vpop.permute.xlu0 %206 }
 0x14c   :  { %1328 = vmatpush3.xpose.msk.msra.mxu0 %vm130_vm3, %v207_v14  ;;  %1334 = vmatprep.mubr.msk.f32.mxu1 %vm1452_vm2, %v1451_v3 }
 0x14d   :  { %1337 = vmatprep.subr.mxu0 %v1451_v3 }
 0x14f   :  { %1330 = vmatmul.mubr.msk.f32.vlgmr.msra.gmra.mxu0 %vm130_vm3, %v1515_v12 }
 0x150   :  { %1339 = vmatprep.mubr.msk.f32.mxu0 %vm1452_vm2, %v1451_v3 }
 0x20b   :  { %v201_v15 = vpop.f32.mrf.mxu1 }
 0x20c   :  { %v283_v16 = vsel %vm282_vm4, %v201_v15, -inf }
 0x20d   :  { %284 = vmax.xlane.f32.xlu1 %v283_v16  ;;  %v1326_v17 = vpop.f32.mrf.mxu1 }
 0x20e   :  { %v958_v17 = vsub.s32 1, %v1499_v5 }
 0x20f   :  { %v278_v18 = vpop.f32.mrf.mxu0 }
 0x210   :  { %v286_v19 = vsel %vm282_vm4, %v278_v18, -inf }
 0x211   :  { %287 = vmax.xlane.f32.xlu1 %v286_v19  ;;  %v1331_v20 = vpop.f32.mrf.mxu0  ;;  %v959_v19 = vrot.slane %v1509_v7, %v958_v17 }
 0x296   :  { %v285_v21 = vpop.xlane.xlu1 %284 }
 0x297   :  { %v289_v22 = vsub.f32 %v201_v15, %v285_v21 }
 0x299   :  { %v291_v23 = vmul.f32 1.442695, %v289_v22 }
 0x29a   :  { %v288_v24 = vpop.xlane.xlu1 %287 }
 0x29b   :  { %1394 = vpow2.f32 %v291_v23  ;;  %v290_v25 = vsub.f32 %v278_v18, %v288_v24 }
 0x29d   :  { %v293_v26 = vmul.f32 1.442695, %v290_v25 }
 0x29f   :  { %1396 = vpow2.f32 %v293_v26 }
 0x2a8   :  { %v1395_v27 = vpop.eup %1394 }
 0x2a9   :  { %v295_v28 = vsel %vm282_vm4, %v1395_v27, 0.0 }
 0x2aa   :  { %296 = vadd.xlane.f32.xlu0 %v295_v28 }
 0x2ac   :  { %v1397_v29 = vpop.eup %1396 }
 0x2ad   :  { %v298_v30 = vsel %vm282_vm4, %v1397_v29, 0.0 }
 0x2ae   :  { %299 = vadd.xlane.f32.xlu1 %v298_v30 }
 0x2bf   :  { %305 = vrot.lane.b32.xlu1 %v1512_v11, %s1454_s2 }
 0x2c0   :  { %457 = vrot.lane.b32.xlu0 %v1512_v11, %s1455_s24 }
 0x2c3   :  { %381 = vrot.lane.b32.xlu1 %v1515_v12, %s1454_s2 }
 0x2c7   :  { %459 = vrot.lane.b32.xlu1 %v1512_v11, %s1456_s25 }
 0x2cb   :  { %537 = vrot.lane.b32.xlu1 %v1515_v12, %s1456_s25 }
 0x2cf   :  { %535 = vrot.lane.b32.xlu1 %v1515_v12, %s1455_s24 }
 0x333   :  { %v297_v31 = vpop.xlane.xlu0 %296 }
 0x334   :  { %1398 = vrcp.f32 %v297_v31 }
 0x337   :  { %v300_v32 = vpop.xlane.xlu1 %299  ;;  %v458_v40 = vpop.permute.xlu0 %457 }
 0x338   :  { %1400 = vrcp.f32 %v300_v32 }
 0x33b   :  { %v306_v33 = vpop.permute.xlu1 %305 }
 0x33c   :  { %1333 = vmatpush3.msra.mxu1 %v306_v33 }
 0x33d   :  { %1342 = vmatprep.subr.mxu1 %v1451_v3 }
 0x33f   :  { %v382_v34 = vpop.permute.xlu1 %381 }
 0x340   :  { %1338 = vmatpush3.msra.mxu0 %v382_v34 }
 0x341   :  { %v1399_v35 = vpop.eup %1398  ;;  %1347 = vmatprep.subr.mxu0 %v1451_v3 }
 0x342   :  { %v302_v36 = vmul.f32 %v1399_v35, %v1395_v27 }
 0x343   :  { %v460_v37 = vpop.permute.xlu1 %459 }
 0x344   :  { %1335 = vmatmul.mubr.msk.f32.vlgmr.msra.gmra.mxu1 %vm282_vm4, %v302_v36 }
 0x345   :  { %v1401_v38 = vpop.eup %1400  ;;  %1343 = vmatpush3.xpose.msk.msra.mxu1 %vm130_vm3, %v460_v37  ;;  %1344 = vmatprep.mubr.msk.f32.mxu1 %vm1452_vm2, %v1451_v3 }
 0x346   :  { %v304_v39 = vmul.f32 %v1401_v38, %v1397_v29  ;;  %1352 = vmatprep.subr.mxu1 %v1451_v3 }
 0x347   :  { %v538_v41 = vpop.permute.xlu1 %537 }
 0x348   :  { %1340 = vmatmul.mubr.msk.f32.vlgmr.msra.gmra.mxu0 %vm282_vm4, %v304_v39  ;;  %1345 = vmatmul.mubr.msk.f32.vlgmr.msra.gmra.mxu1 %vm130_vm3, %v458_v40  ;;  %v33_v40 = vld [vmem:[#allocation2 + $0x18] sm:$0xff] }
 0x349   :  { %1348 = vmatpush3.xpose.msk.msra.mxu0 %vm130_vm3, %v538_v41  ;;  %1349 = vmatprep.mubr.msk.f32.mxu0 %vm1452_vm2, %v1451_v3 }
 0x34a   :  { %1357 = vmatprep.subr.mxu0 %v1451_v3  ;;  %1354 = vmatprep.mubr.msk.f32.mxu1 %vm1452_vm2, %v1451_v3 }
 0x34b   :  { %v536_v42 = vpop.permute.xlu1 %535 }
 0x34c   :  { %1350 = vmatmul.mubr.msk.f32.vlgmr.msra.gmra.mxu0 %vm130_vm3, %v536_v42 }
 0x34d   :  { %1359 = vmatprep.mubr.msk.f32.mxu0 %vm1452_vm2, %v1451_v3 }
 0x404   :  { %v377_v43 = vpop.f32.mrf.mxu1 }
 0x406   :  { %v1336_v44 = vpop.f32.mrf.mxu1 }
 0x408   :  { %v453_v45 = vpop.f32.mrf.mxu0  ;;  %v531_v46 = vpop.f32.mrf.mxu1 }
 0x409   :  { %v613_v47 = vsel %vm282_vm4, %v531_v46, -inf }
 0x40a   :  { %v1341_v48 = vpop.f32.mrf.mxu0  ;;  %614 = vmax.xlane.f32.xlu1 %v613_v47  ;;  %v1346_v49 = vpop.f32.mrf.mxu1 }
 0x40c   :  { %v609_v50 = vpop.f32.mrf.mxu0 }
 0x40d   :  { %v616_v51 = vsel %vm282_vm4, %v609_v50, -inf }
 0x40e   :  { %617 = vmax.xlane.f32.xlu0 %v616_v51  ;;  %v1351_v52 = vpop.f32.mrf.mxu0 }
 0x424   :  { %711 = vrot.lane.b32.xlu0 %v1515_v12, %s1457_s26  ;;  %v32_v12 = vld [vmem:[#allocation2 + $0x10] sm:$0xff] }
 0x493   :  { %v615_v53 = vpop.xlane.xlu1 %614 }
 0x494   :  { %v619_v54 = vsub.f32 %v531_v46, %v615_v53 }
 0x496   :  { %v621_v57 = vmul.f32 1.442695, %v619_v54 }
 0x497   :  { %v618_v55 = vpop.xlane.xlu0 %617 }
 0x498   :  { %v620_v56 = vsub.f32 %v609_v50, %v618_v55 }
 0x49a   :  { %v623_v58 = vmul.f32 1.442695, %v620_v56  ;;  %v1007_v56 = vsub.s32 2, %v1499_v5 }
 0x49b   :  { %v712_v59 = vpop.permute.xlu0 %711 }
 0x49c   :  { %1402 = vpow2.f32 %v623_v58  ;;  %1358 = vmatpush3.msra.mxu0 %v712_v59  ;;  %v1008_v59 = vrot.slane %v1509_v7, %v1007_v56 }
 0x49d   :  { %1404 = vpow2.f32 %v621_v57  ;;  %1367 = vmatprep.subr.msk.mxu0 %vm793_vm5, %v31_v0 }
 0x4a9   :  { %v1403_v60 = vpop.eup %1402 }
 0x4aa   :  { %v628_v61 = vsel %vm282_vm4, %v1403_v60, 0.0  ;;  %v1405_v62 = vpop.eup %1404 }
 0x4ab   :  { %629 = vadd.xlane.f32.xlu1 %v628_v61  ;;  %v625_v63 = vsel %vm282_vm4, %v1405_v62, 0.0 }
 0x4af   :  { %626 = vadd.xlane.f32.xlu1 %v625_v63 }
 0x4c0   :  { %635 = vrot.lane.b32.xlu1 %v1512_v11, %s1457_s26 }
 0x534   :  { %v630_v3 = vpop.xlane.xlu1 %629 }
 0x535   :  { %1406 = vrcp.f32 %v630_v3 }
 0x538   :  { %v627_v4 = vpop.xlane.xlu1 %626 }
 0x539   :  { %1408 = vrcp.f32 %v627_v4 }
 0x53c   :  { %v636_v6 = vpop.permute.xlu1 %635 }
 0x53d   :  { %1353 = vmatpush3.msra.mxu1 %v636_v6 }
 0x53e   :  { %1362 = vmatprep.subr.msk.mxu1 %vm793_vm5, %v32_v12 }
 0x542   :  { %v1407_v8 = vpop.eup %1406 }
 0x543   :  { %v634_v9 = vmul.f32 %v1407_v8, %v1403_v60  ;;  %v1013_v60 = vsub.s32 3, %v1499_v5  ;;  %v35_v8 = vld [vmem:[#allocation2 + $0x28] sm:$0xff] }
 0x545   :  { %1360 = vmatmul.mubr.msk.f32.vlgmr.msra.gmra.mxu0 %vm282_vm4, %v634_v9  ;;  %v34_v9 = vld [vmem:[#allocation2 + $0x20] sm:$0xff] }
 0x546   :  { %v1409_v10 = vpop.eup %1408  ;;  %1369 = vmatprep.mubr.msk.f32.mxu0 %vm130_vm3, %v377_v43  ;;  %1368 = vmatpush3.msk.msra.mxu0 %vm793_vm5, %v31_v0  ;;  %v1014_v0 = vrot.slane %v1509_v7, %v1013_v60 }
 0x547   :  { %v632_v11 = vmul.f32 %v1409_v10, %v1405_v62  ;;  %1377 = vmatprep.subr.msk.mxu0 %vm1118_vm10, %v35_v8  ;;  %v1019_v10 = vsub.s32 4, %v1499_v5 }
 0x549   :  { %1355 = vmatmul.mubr.msk.f32.vlgmr.msra.gmra.mxu1 %vm282_vm4, %v632_v11  ;;  %1370 = vmatmul.mubr.msk.f32.vlgmr.msra.gmra.mxu0 %vm130_vm3, %v453_v45  ;;  %v1020_v11 = vrot.slane %v1509_v7, %v1019_v10 }
 0x54a   :  { %1363 = vmatpush3.msk.msra.mxu1 %vm793_vm5, %v32_v12  ;;  %1378 = vmatpush3.msk.msra.mxu0 %vm1118_vm10, %v35_v8 }
 0x54b   :  { %1372 = vmatprep.subr.msk.mxu1 %vm48_vm0, %v33_v40  ;;  %1379 = vmatprep.subr.mxu0 %v34_v9 }
 0x54c   :  { %1380 = vmatpush3.msra.mxu0 %v34_v9 }
 0x605   :  { %v783_v13 = vpop.f32.mrf.mxu0 }
 0x607   :  { %v1361_v14 = vpop.f32.mrf.mxu0 }
 0x609   :  { %v707_v15 = vpop.f32.mrf.mxu1  ;;  %v1371_v18 = vpop.f32.mrf.mxu0 }
 0x60a   :  { %1364 = vmatprep.mubr.msk.f32.mxu1 %vm130_vm3, %v707_v15 }
 0x60b   :  { %v1356_v16 = vpop.f32.mrf.mxu1  ;;  %1365 = vmatmul.mubr.msk.f32.vlgmr.msra.gmra.mxu1 %vm130_vm3, %v783_v13  ;;  %v947_v22 = vpop.f32.mrf.mxu0 }
 0x60c   :  { %1373 = vmatpush3.msk.msra.mxu1 %vm48_vm0, %v33_v40 }
 0x6cb   :  { %v1366_v20 = vpop.f32.mrf.mxu1 }
 0x6cc   :  { %v953_v21 = vadd.f32 %v1371_v18, %v1366_v20  ;;  %v1109_v18 = vsub.s32 5, %v1499_v5 }
 0x6cd   :  { %v863_v23 = vpop.f32.mrf.mxu1 }
 0x6ce   :  { %v961_v24 = vadd.f32 %v959_v19, %v953_v21  ;;  %v948_v25 = vadd.f32 %v947_v22, %v863_v23 }
 0x6d0   :  { %v960_v26 = vadd.f32 %v959_v19, %v948_v25  ;;  %v963_v27 = vadd.f32 %v961_v24, %v1489_v2  ;;  %v1110_v19 = vrot.slane %v1509_v7, %v1109_v18 }
 0x6d2   :  { %v967_v28 = vsel %vm41_vm1, %v963_v27, 0.0  ;;  %v962_v29 = vadd.f32 %v960_v26, %v1484_v1 }
 0x6d3   :  { %968 = vadd.xlane.f32.xlu0 %v967_v28 }
 0x6d4   :  { %v964_v30 = vsel %vm41_vm1, %v962_v29, 0.0 }
 0x6d5   :  { %965 = vadd.xlane.f32.xlu1 %v964_v30 }
 0x75c   :  { %v969_v31 = vpop.xlane.xlu0 %968 }
 0x75d   :  { %v972_v32 = vmul.f32 0.16666667, %v969_v31 }
 0x75e   :  { %v966_v33 = vpop.xlane.xlu1 %965 }
 0x75f   :  { %v974_v34 = vsub.f32 %v963_v27, %v972_v32  ;;  %v971_v35 = vmul.f32 0.16666667, %v966_v33 }
 0x761   :  { %v973_v36 = vsub.f32 %v962_v29, %v971_v35  ;;  %v976_v37 = vmul.f32 %v974_v34, %v974_v34 }
 0x763   :  { %v980_v38 = vsel %vm41_vm1, %v976_v37, 0.0  ;;  %v975_v39 = vmul.f32 %v973_v36, %v973_v36 }
 0x764   :  { %981 = vadd.xlane.f32.xlu0 %v980_v38 }
 0x765   :  { %v977_v2 = vsel %vm41_vm1, %v975_v39, 0.0 }
 0x766   :  { %978 = vadd.xlane.f32.xlu1 %v977_v2 }
 0x7ed   :  { %v982_v1 = vpop.xlane.xlu0 %981 }
 0x7ee   :  { %v984_v41 = vmul.f32 0.16666667, %v982_v1 }
 0x7ef   :  { %v979_v42 = vpop.xlane.xlu1 %978 }
 0x7f0   :  { %1410 = vrsqrt.f32 %v984_v41  ;;  %v983_v43 = vmul.f32 0.16666667, %v979_v42  ;;  %vm994_vm6 = vcmp.eq.f32.partialorder %v984_v41, inf  ;;  %v997_v46 = vand.u32 2147483648, %v984_v41 }
 0x7f1   :  { %vm996_vm7 = vcmp.eq.f32.partialorder %v984_v41, 0.0 }
 0x7f2   :  { %1412 = vrsqrt.f32 %v983_v43  ;;  %vm987_vm8 = vcmp.eq.f32.partialorder %v983_v43, inf  ;;  %v990_v52 = vand.u32 2147483648, %v983_v43  ;;  %vm989_vm9 = vcmp.eq.f32.partialorder %v983_v43, 0.0 }
 0x7fd   :  { %v1411_v44 = vpop.eup %1410 }
 0x7fe   :  { %v993_v45 = vmul.f32 %v1411_v44, %v984_v41 }
 0x7ff   :  { %v1413_v47 = vpop.eup %1412 }
 0x800   :  { %v995_v48 = vsel %vm994_vm6, %v984_v41, %v993_v45  ;;  %v986_v50 = vmul.f32 %v1413_v47, %v983_v43 }
 0x801   :  { %v998_v49 = vsel %vm996_vm7, %v997_v46, %v995_v48 }
 0x802   :  { %v1000_v51 = vadd.f32 1e-05, %v998_v49  ;;  %v988_v53 = vsel %vm987_vm8, %v983_v43, %v986_v50 }
 0x803   :  { %v991_v54 = vsel %vm989_vm9, %v990_v52, %v988_v53  ;;  %v1241_v52 = vsub.s32 6, %v1499_v5  ;;  %v1247_v53 = vsub.s32 7, %v1499_v5 }
 0x804   :  { %1414 = vrcp.f32 %v1000_v51  ;;  %v999_v55 = vadd.f32 1e-05, %v991_v54 }
 0x805   :  { %v1242_v54 = vrot.slane %v1509_v7, %v1241_v52  ;;  %v1248_v56 = vrot.slane %v1509_v7, %v1247_v53 }
 0x806   :  { %1416 = vrcp.f32 %v999_v55 }
 0x811   :  { %v1415_v57 = vpop.eup %1414 }
 0x812   :  { %v1004_v58 = vmul.f32 %v1415_v57, %v974_v34 }
 0x813   :  { %v1417_v61 = vpop.eup %1416 }
 0x814   :  { %v1002_v62 = vmul.f32 %v1417_v61, %v973_v36  ;;  %v1010_v63 = vmul.f32 %v1008_v59, %v1004_v58 }
 0x816   :  { %v1009_v3 = vmul.f32 %v1008_v59, %v1002_v62  ;;  %v1016_v6 = vadd.f32 %v1014_v0, %v1010_v63 }
 0x818   :  { %v1015_v4 = vadd.f32 %v1014_v0, %v1009_v3 }
 0x81a   :  { %1374 = vmatprep.mubr.msk.f32.mxu1 %vm41_vm1, %v1015_v4 }
 0x81b   :  { %1375 = vmatmul.mubr.msk.f32.vlgmr.msra.gmra.mxu1 %vm41_vm1, %v1016_v6 }
 0x8db   :  { %v1376_v12 = vpop.f32.mrf.mxu1 }
 0x8dc   :  { %v1102_v13 = vadd.f32 %v1376_v12, %v1020_v11 }
 0x8dd   :  { %v1096_v14 = vpop.f32.mrf.mxu1 }
 0x8de   :  { %v1097_v15 = vadd.f32 %v1096_v14, %v1020_v11  ;;  %v1106_v17 = vmax.f32 %v1102_v13, 0.0 }
 0x8e0   :  { %v1105_v16 = vmax.f32 %v1097_v15, 0.0 }
 0x8e2   :  { %1381 = vmatprep.mubr.msk.f32.mxu0 %vm1111_vm11, %v1105_v16 }
 0x8e3   :  { %1382 = vmatmul.mubr.msk.f32.vlgmr.msra.gmra.mxu0 %vm1111_vm11, %v1106_v17 }
 0x9a3   :  { %v1383_v20 = vpop.f32.mrf.mxu0 }
 0x9a4   :  { %v1194_v21 = vadd.f32 %v1383_v20, %v1110_v19 }
 0x9a5   :  { %v1188_v22 = vpop.f32.mrf.mxu0 }
 0x9a6   :  { %v1189_v23 = vadd.f32 %v1188_v22, %v1110_v19  ;;  %v1198_v24 = vadd.f32 %v1194_v21, %v1016_v6 }
 0x9a8   :  { %v1202_v25 = vsel %vm41_vm1, %v1198_v24, 0.0  ;;  %v1197_v26 = vadd.f32 %v1189_v23, %v1015_v4 }
 0x9a9   :  { %1203 = vadd.xlane.f32.xlu0 %v1202_v25 }
 0x9aa   :  { %v1199_v27 = vsel %vm41_vm1, %v1197_v26, 0.0 }
 0x9ab   :  { %1200 = vadd.xlane.f32.xlu1 %v1199_v27 }
 0xa32   :  { %v1204_v28 = vpop.xlane.xlu0 %1203 }
 0xa33   :  { %v1206_v29 = vmul.f32 0.16666667, %v1204_v28 }
 0xa34   :  { %v1201_v30 = vpop.xlane.xlu1 %1200 }
 0xa35   :  { %v1208_v31 = vsub.f32 %v1198_v24, %v1206_v29  ;;  %v1205_v32 = vmul.f32 0.16666667, %v1201_v30 }
 0xa37   :  { %v1207_v33 = vsub.f32 %v1197_v26, %v1205_v32  ;;  %v1210_v34 = vmul.f32 %v1208_v31, %v1208_v31 }
 0xa39   :  { %v1214_v35 = vsel %vm41_vm1, %v1210_v34, 0.0  ;;  %v1209_v36 = vmul.f32 %v1207_v33, %v1207_v33 }
 0xa3a   :  { %1215 = vadd.xlane.f32.xlu0 %v1214_v35 }
 0xa3b   :  { %v1211_v37 = vsel %vm41_vm1, %v1209_v36, 0.0 }
 0xa3c   :  { %1212 = vadd.xlane.f32.xlu1 %v1211_v37 }
 0xac3   :  { %v1216_v38 = vpop.xlane.xlu0 %1215 }
 0xac4   :  { %v1218_v39 = vmul.f32 0.16666667, %v1216_v38 }
 0xac5   :  { %v1213_v2 = vpop.xlane.xlu1 %1212 }
 0xac6   :  { %1418 = vrsqrt.f32 %v1218_v39  ;;  %v1217_v40 = vmul.f32 0.16666667, %v1213_v2  ;;  %vm1228_vm12 = vcmp.eq.f32.partialorder %v1218_v39, inf  ;;  %v1231_v42 = vand.u32 2147483648, %v1218_v39 }
 0xac7   :  { %vm1230_vm13 = vcmp.eq.f32.partialorder %v1218_v39, 0.0 }
 0xac8   :  { %1420 = vrsqrt.f32 %v1217_v40  ;;  %vm1221_vm14 = vcmp.eq.f32.partialorder %v1217_v40, inf  ;;  %v1224_v48 = vand.u32 2147483648, %v1217_v40  ;;  %vm1223_vm15 = vcmp.eq.f32.partialorder %v1217_v40, 0.0 }
 0xad3   :  { %v1419_v1 = vpop.eup %1418 }
 0xad4   :  { %v1227_v41 = vmul.f32 %v1419_v1, %v1218_v39 }
 0xad5   :  { %v1421_v43 = vpop.eup %1420 }
 0xad6   :  { %v1229_v44 = vsel %vm1228_vm12, %v1218_v39, %v1227_v41  ;;  %v1220_v46 = vmul.f32 %v1421_v43, %v1217_v40 }
 0xad7   :  { %v1232_v45 = vsel %vm1230_vm13, %v1231_v42, %v1229_v44 }
 0xad8   :  { %v1234_v47 = vadd.f32 1e-05, %v1232_v45  ;;  %v1222_v49 = vsel %vm1221_vm14, %v1217_v40, %v1220_v46 }
 0xad9   :  { %v1225_v50 = vsel %vm1223_vm15, %v1224_v48, %v1222_v49 }
 0xada   :  { %1422 = vrcp.f32 %v1234_v47  ;;  %v1233_v51 = vadd.f32 1e-05, %v1225_v50 }
 0xadc   :  { %1424 = vrcp.f32 %v1233_v51 }
 0xae7   :  { %v1423_v55 = vpop.eup %1422 }
 0xae8   :  { %v1238_v57 = vmul.f32 %v1423_v55, %v1208_v31 }
 0xae9   :  { %v1425_v58 = vpop.eup %1424 }
 0xaea   :  { %v1244_v59 = vmul.f32 %v1242_v54, %v1238_v57  ;;  %v1236_v60 = vmul.f32 %v1425_v58, %v1207_v33 }
 0xaec   :  { %v1250_v61 = vadd.f32 %v1248_v56, %v1244_v59  ;;  %v1243_v62 = vmul.f32 %v1242_v54, %v1236_v60 }
 0xaee   :  { %1252 = vst.msk [vmem:[%s1613_s3 + $0x8] sm:$0xff] %vm41_vm1, %v1250_v61  ;;  %v1249_v63 = vadd.f32 %v1248_v56, %v1243_v62 }
 0xaf0   :  { %1251 = vst.msk [vmem:[%s1613_s3] sm:$0xff] %vm41_vm1, %v1249_v63 }
 0xaf1   :  { %1257 = vsyncpa [#allocation3], 1 }

</bundles_post_ra>
